<compile_context>
chip_gen: v6e
topology: v6e:2x2x1
jax: 0.10.0
libtpu: 0.0.40
codegen_flags: <defaults>
</compile_context>

<pallas_src>
import functools

import jax
import jax.numpy as jnp
from jax.experimental import pallas as pl
from jax.experimental.pallas import tpu as pltpu

F32 = jnp.float32
BF16 = jnp.bfloat16


# ----------------------------------------------------------------------------- #
# Kernel bodies (shared helpers, transposed "[features, nodes]" orientation).
# ----------------------------------------------------------------------------- #
def _propagate_t(feat_t, a_rows):
    # (Â_rows @ feat)^T for a row tile of Â:  [F, N] x [tm, N] -> [F, tm].
    return jax.lax.dot_general(
        feat_t, a_rows,
        dimension_numbers=(((1,), (1,)), ((), ())),
        preferred_element_type=F32)


def _mlp_t(h_t, lw1_ref, lb1f_ref, lw2_ref, lb2_ref):
    # Linear1 + ReLU + Linear2, transposed:
    #   [L1, H2] @ [H2, tm] -> [L1, tm];  [L2, L1] @ [L1, tm] -> [L2, tm].
    y = jnp.dot(lw1_ref[...].astype(F32), h_t,
                preferred_element_type=F32) + lb1f_ref[...]
    y = jnp.maximum(y, 0.0)
    return jnp.dot(lw2_ref[...].astype(F32), y,
                   preferred_element_type=F32) + lb2_ref[...]


def _fused_kernel(a_ref, xwt_ref, b12_ref, lw1_ref, lb1f_ref, lw2_ref, lb2_ref,
                  out_ref):
    # Small-N path: Â resident in VMEM, read from HBM exactly once; h1 never
    # round-trips through HBM; a single launch / pipeline prologue.
    a = a_ref[...].astype(F32)                                        # [N, N]
    h1_t = _propagate_t(xwt_ref[...].astype(F32), a) + b12_ref[...]   # [H2, N]
    h2_t = _propagate_t(h1_t, a)                                      # [H2, N] (b2 folded into lb1f)
    out_ref[...] = _mlp_t(h2_t, lw1_ref, lb1f_ref, lw2_ref, lb2_ref)  # [L2, N]


def _prop1_kernel(a_ref, xwt_ref, b12_ref, h1t_ref):
    # First propagation over a row tile of Â.  X @ W12 is hoisted to the wrapper
    # (xwt), so nothing is recomputed per grid step.  h1 is emitted transposed
    # ([H2, tm]) so the store is lane-dense and call 2 re-reads a dense layout.
    a = a_ref[...].astype(F32)                                        # [tm, N]
    h1_t = _propagate_t(xwt_ref[...].astype(F32), a) + b12_ref[...]   # [H2, tm]
    h1t_ref[...] = h1_t.astype(h1t_ref.dtype)


def _prop2_mlp_kernel(a_ref, h1t_ref, lw1_ref, lb1f_ref, lw2_ref, lb2_ref,
                      out_ref):
    # Second propagation + MLP, fully in the transposed orientation.
    a = a_ref[...].astype(F32)                                        # [tm, N]
    h2_t = _propagate_t(h1t_ref[...].astype(F32), a)                  # [H2, tm]
    out_ref[...] = _mlp_t(h2_t, lw1_ref, lb1f_ref, lw2_ref, lb2_ref)


# ----------------------------------------------------------------------------- #
# Tiling / VMEM sizing helpers (per-generation).
# ----------------------------------------------------------------------------- #
def _vmem_budget_bytes():
    # ~56 MiB on v7x (64 MiB physical / TC), ~112 MiB on v5e/v6e (128 MiB physical).
    try:
        cap = pltpu.get_tpu_info().vmem_capacity_bytes
    except Exception:  # non-TPU backend (e.g. interpret mode) -> assume 128 MiB class
        cap = 128 * 1024 * 1024
    return (cap // 8) * 7


def _round_up(x, m):
    return ((x + m - 1) // m) * m


def _choose_tm(n, budget):
    # Largest 128-multiple row tile such that the double-buffered bf16 Â tile plus
    # its in-kernel f32 upcast (2*2 + 4 = 8 B/elem) fits in ~60% of the budget
    # (rest: resident operands, output blocks, compiler scratch).
    usable = int(budget * 0.6)
    tm = usable // (8 * n)
    tm = max(128, min(512, (tm // 128) * 128))
    tm = min(tm, _round_up(n, 128))
    # v7x megacore: keep >= 2 "parallel" grid steps so both TensorCores get work;
    # prefer halving the tile over running a 1-step grid.
    if -(-n // tm) < 2 and n > 128:
        tm = max(128, _round_up((n + 1) // 2, 128))
    return tm


# ----------------------------------------------------------------------------- #
# Forward pass: plain-JAX glue (feature selection, adjacency build) + Pallas.
# ----------------------------------------------------------------------------- #
def graphnet_forward(x_raw, edge_index, current_y, params, k):
    n, _ = x_raw.shape

    # (dead code in the original forward: x = x / ||x|| is overwritten right after)

    # TODO(synk): sklearn SelectKBest(chi2) has no Pallas/JAX equivalent; chi2
    # scoring + top-k column selection is re-implemented in plain JAX (binary
    # labels; NaN / tie-break handling differs from sklearn).
    y = current_y.T.squeeze().astype(jnp.int32)                      # [N]
    y_onehot = jax.nn.one_hot(y, 2, dtype=F32)                       # [N, 2]
    observed = y_onehot.T @ x_raw                                    # [2, F]
    feature_count = x_raw.sum(axis=0)                                # [F]
    expected = jnp.outer(y_onehot.mean(axis=0), feature_count)       # [2, F]
    safe_exp = jnp.where(expected > 0.0, expected, 1.0)
    chi2 = jnp.sum(jnp.where(expected > 0.0,
                             (observed - expected) ** 2 / safe_exp, 0.0), axis=0)
    sel_idx = jnp.sort(jnp.argsort(-chi2)[:k])                       # keep original column order
    x_sel = x_raw[:, sel_idx].astype(F32)                            # [N, k]

    # Dense GCN propagation matrix Â = D^-1/2 (A + I) D^-1/2, scattered straight
    # into bf16 (avoids the f32 NxN materialisation + a second bf16 copy).  bf16
    # accumulation only differs from f32 when the edge list contains duplicates.
    src, dst = edge_index[0], edge_index[1]
    not_loop = (src != dst).astype(F32)
    deg = jnp.ones((n,), F32).at[dst].add(not_loop)                  # in-degree + self loop
    dinv = jax.lax.rsqrt(deg)
    diag = jnp.arange(n)
    a_bf = (jnp.zeros((n, n), BF16)
            .at[dst, src].add((not_loop * dinv[dst] * dinv[src]).astype(BF16))
            .at[diag, diag].add((dinv * dinv).astype(BF16)))

    w1, b1, w2, b2, lw1, lb1, lw2, lb2 = params
    hidden2 = w2.shape[1]
    lin1_out = lw1.shape[0]
    out_dim = lw2.shape[0]

    # Algebraic fusion of the two convs; X @ (W1 W2) hoisted out of the kernels,
    # b2 folded into Linear1's bias:  Lin1(z + b2) = z lw1^T + (b2 lw1^T + lb1).
    w12 = w1 @ w2                                                    # [K, H2]
    xwt = (x_sel @ w12).T.astype(BF16)                               # [H2, N]  (lane-dense in N)
    b12c = (b1 @ w2).reshape(-1, 1).astype(F32)                      # [H2, 1]
    lb1f = (lb1 + b2 @ lw1.T).reshape(-1, 1).astype(F32)             # [L1, 1]
    lw1_bf = lw1.astype(BF16)                                        # [L1, H2]
    lw2_bf = lw2.astype(BF16)                                        # [L2, L1]
    lb2c = lb2.reshape(-1, 1).astype(F32)                            # [L2, 1]

    budget = _vmem_budget_bytes()

    # ---- small-N fused path: Â fits in VMEM -> one call, Â read from HBM once ----
    fused_bytes = (6 * n * n                       # bf16 Â + in-kernel f32 copy
                   + 14 * hidden2 * n              # xwt (bf16 + f32 upcast) + h1_t/h2_t f32
                   + 8 * lin1_out * n + 8 * out_dim * n)
    if fused_bytes <= int(budget * 0.75):
        vmem = pl.BlockSpec(memory_space=pltpu.MemorySpace.VMEM)
        out = pl.pallas_call(
            _fused_kernel,
            out_shape=jax.ShapeDtypeStruct((out_dim, n), F32),
            in_specs=[vmem] * 7,
            out_specs=vmem,
            compiler_params=pltpu.CompilerParams(vmem_limit_bytes=budget),
        )(a_bf, xwt, b12c, lw1_bf, lb1f, lw2_bf, lb2c)
        return out                                  # already [out_dim, N] == x.t()

    # ---- large-N path: stream Â row tiles twice (prop1, then prop2 + MLP) --------
    tm = _choose_tm(n, budget)
    grid = (pl.cdiv(n, tm),)
    cparams = pltpu.CompilerParams(
        dimension_semantics=("parallel",),           # shards row tiles across v7x's 2 TCs
        vmem_limit_bytes=budget)

    # Resident operands are fetched once; single-buffer them so their VMEM
    # footprint isn't doubled (frees budget for a larger Â row tile).
    def resident(shape):
        nd = len(shape)
        return pl.BlockSpec(shape, lambda *_i, _nd=nd: (0,) * _nd,
                            pipeline_mode=pl.Buffered(1))

    # Â row tile.  If profiling shows exposed DMA gaps on v5e/v6e (128 MiB VMEM),
    # this is the spec to bump to pl.Buffered(3); on v7x keep 2 buffers, grow tm.
    a_spec = pl.BlockSpec((tm, n), lambda i: (i, 0))

    # NOTE: when n % tm != 0 the padded rows of the last Â tile compute garbage
    # columns of the transposed output; Pallas masks those out-of-range lanes on
    # store, and h1_t is only ever re-read over its true [H2, n] extent.
    h1t = pl.pallas_call(
        _prop1_kernel,
        out_shape=jax.ShapeDtypeStruct((hidden2, n), BF16),
        grid=grid,
        in_specs=[a_spec, resident(xwt.shape), resident(b12c.shape)],
        out_specs=pl.BlockSpec((hidden2, tm), lambda i: (0, i)),
        compiler_params=cparams,
    )(a_bf, xwt, b12c)

    out = pl.pallas_call(
        _prop2_mlp_kernel,
        out_shape=jax.ShapeDtypeStruct((out_dim, n), F32),
        grid=grid,
        in_specs=[a_spec, resident(h1t.shape), resident(lw1_bf.shape),
                  resident(lb1f.shape), resident(lw2_bf.shape), resident(lb2c.shape)],
        out_specs=pl.BlockSpec((out_dim, tm), lambda i: (0, i)),
        compiler_params=cparams,
    )(a_bf, h1t, lw1_bf, lb1f, lw2_bf, lb2c)

    return out                                      # [out_dim, N] == x.t()


if __name__ == "__main__":
    # Small shapes consistent with the module (scaled down from 100/10/1):
    # N=32 nodes, 64 raw features, k=32 selected, convs=[(32,32),(32,32)],
    # lin=[(32,16),(16,1)].
    N, F_RAW, K = 32, 64, 32
    H1, H2 = 32, 32
    L1_OUT, L2_OUT = 16, 1

    key = jax.random.PRNGKey(0)
    keys = jax.random.split(key, 10)

    # Non-negative features (chi2 requires non-negative X), binary labels.
    x_raw = jax.random.uniform(keys[0], (N, F_RAW), jnp.float32)
    current_y = (jax.random.uniform(keys[1], (N, 1)) > 0.5).astype(jnp.float32)
    n_edges = 96
    src = jax.random.randint(keys[2], (n_edges,), 0, N)
    dst = jax.random.randint(keys[3], (n_edges,), 0, N)
    edge_index = jnp.stack([src, dst], axis=0)                       # [2, E]

    # Deterministic parameter init (synthetic, not a checkpoint).
    def init_w(k_, shape, fan_in):
        bound = 1.0 / jnp.sqrt(fan_in)
        return jax.random.uniform(k_, shape, jnp.float32, -bound, bound)

    w1 = init_w(keys[4], (K, H1), K)          # GCNConv1 weight [in, out]
    b1 = jnp.zeros((H1,), jnp.float32)
    w2 = init_w(keys[5], (H1, H2), H1)        # GCNConv2 weight [in, out]
    b2 = jnp.zeros((H2,), jnp.float32)
    lw1 = init_w(keys[6], (L1_OUT, H2), H2)   # nn.Linear weight [out, in]
    lb1 = init_w(keys[7], (L1_OUT,), H2)
    lw2 = init_w(keys[8], (L2_OUT, L1_OUT), L1_OUT)
    lb2 = init_w(keys[9], (L2_OUT,), L1_OUT)

    params = (w1, b1, w2, b2, lw1, lb1, lw2, lb2)

    fwd = jax.jit(functools.partial(graphnet_forward, k=K))
    out = fwd(x_raw, edge_index, current_y, params)
    out = jax.block_until_ready(out)
    assert out.shape == (1, N), out.shape
    assert bool(jnp.all(jnp.isfinite(out)))
    print("KERNEL_OK")
</pallas_src>

<mosaic_0001>
module attributes {stable_mosaic.version = 11 : i64} {
  func.func private @main(%arg0: i32) attributes {dimension_semantics = [#tpu.dimension_semantics<core_parallel>], iteration_bounds = array<i64: 2>, tpu.core_type = #tpu.core_type<sc_scalar_subcore>, window_params = []} {
    return
  }
}

module attributes {stable_mosaic.version = 11 : i64} {
  func.func private @main(%arg0: i32) attributes {dimension_semantics = [#tpu.dimension_semantics<core_parallel>], iteration_bounds = array<i64: 2>, tpu.core_type = #tpu.core_type<sc_scalar_subcore>, window_params = []} {
    return
  }
}

module attributes {stable_mosaic.version = 11 : i64} {
  func.func @_fused_kernel(%arg0: memref<32x32xbf16, #tpu.memory_space<vmem>>, %arg1: memref<32x32xbf16, #tpu.memory_space<vmem>>, %arg2: memref<32x1xf32, #tpu.memory_space<vmem>>, %arg3: memref<16x32xbf16, #tpu.memory_space<vmem>>, %arg4: memref<16x1xf32, #tpu.memory_space<vmem>>, %arg5: memref<1x16xbf16, #tpu.memory_space<vmem>>, %arg6: memref<1x1xf32, #tpu.memory_space<vmem>>, %arg7: memref<1x32xf32, #tpu.memory_space<vmem>>) attributes {dimension_semantics = [], scalar_prefetch = 0 : i64, scratch_operands = 0 : i64, tpu.core_type = #tpu.core_type<tc>} {
    %c0 = arith.constant 0 : index
    %c0_0 = arith.constant 0 : index
    %0 = vector.load %arg0[%c0, %c0_0] : memref<32x32xbf16, #tpu.memory_space<vmem>>, vector<32x32xbf16>
    %1 = arith.extf %0 : vector<32x32xbf16> to vector<32x32xf32>
    %c0_1 = arith.constant 0 : index
    %c0_2 = arith.constant 0 : index
    %2 = vector.load %arg1[%c0_1, %c0_2] : memref<32x32xbf16, #tpu.memory_space<vmem>>, vector<32x32xbf16>
    %3 = arith.extf %2 : vector<32x32xbf16> to vector<32x32xf32>
    %cst = arith.constant dense<0.000000e+00> : vector<32x32xf32>
    %4 = tpu.matmul %3, %1, %cst {dimension_numbers = #tpu.dot_dimension_numbers<[1], [1], [0], [0], [0, 0, 1, 0], [], []>} : vector<32x32xf32>, vector<32x32xf32>, vector<32x32xf32> -> vector<32x32xf32>
    %c0_3 = arith.constant 0 : index
    %c0_4 = arith.constant 0 : index
    %5 = vector.load %arg2[%c0_3, %c0_4] : memref<32x1xf32, #tpu.memory_space<vmem>>, vector<32x1xf32>
    %6 = vector.broadcast %5 : vector<32x1xf32> to vector<32x32xf32>
    %7 = arith.addf %4, %6 : vector<32x32xf32>
    %cst_5 = arith.constant dense<0.000000e+00> : vector<32x32xf32>
    %8 = tpu.matmul %7, %1, %cst_5 {dimension_numbers = #tpu.dot_dimension_numbers<[1], [1], [0], [0], [0, 0, 1, 0], [], []>} : vector<32x32xf32>, vector<32x32xf32>, vector<32x32xf32> -> vector<32x32xf32>
    %c0_6 = arith.constant 0 : index
    %c0_7 = arith.constant 0 : index
    %9 = vector.load %arg3[%c0_6, %c0_7] : memref<16x32xbf16, #tpu.memory_space<vmem>>, vector<16x32xbf16>
    %10 = arith.extf %9 : vector<16x32xbf16> to vector<16x32xf32>
    %cst_8 = arith.constant dense<0.000000e+00> : vector<16x32xf32>
    %11 = tpu.matmul %10, %8, %cst_8 {dimension_numbers = #tpu.dot_dimension_numbers<[1], [0], [0], [1], [0, 0, 1, 1], [], []>} : vector<16x32xf32>, vector<32x32xf32>, vector<16x32xf32> -> vector<16x32xf32>
    %c0_9 = arith.constant 0 : index
    %c0_10 = arith.constant 0 : index
    %12 = vector.load %arg4[%c0_9, %c0_10] : memref<16x1xf32, #tpu.memory_space<vmem>>, vector<16x1xf32>
    %13 = vector.broadcast %12 : vector<16x1xf32> to vector<16x32xf32>
    %14 = arith.addf %11, %13 : vector<16x32xf32>
    %cst_11 = arith.constant 0.000000e+00 : f32
    %15 = vector.broadcast %cst_11 : f32 to vector<16x32xf32>
    %16 = arith.maximumf %14, %15 : vector<16x32xf32>
    %c0_12 = arith.constant 0 : index
    %c0_13 = arith.constant 0 : index
    %17 = vector.load %arg5[%c0_12, %c0_13] : memref<1x16xbf16, #tpu.memory_space<vmem>>, vector<1x16xbf16>
    %18 = arith.extf %17 : vector<1x16xbf16> to vector<1x16xf32>
    %cst_14 = arith.constant dense<0.000000e+00> : vector<1x32xf32>
    %19 = tpu.matmul %18, %16, %cst_14 {dimension_numbers = #tpu.dot_dimension_numbers<[1], [0], [0], [1], [0, 0, 1, 1], [], []>} : vector<1x16xf32>, vector<16x32xf32>, vector<1x32xf32> -> vector<1x32xf32>
    %c0_15 = arith.constant 0 : index
    %c0_16 = arith.constant 0 : index
    %20 = vector.load %arg6[%c0_15, %c0_16] : memref<1x1xf32, #tpu.memory_space<vmem>>, vector<1x1xf32>
    %21 = vector.broadcast %20 : vector<1x1xf32> to vector<1x32xf32>
    %22 = arith.addf %19, %21 : vector<1x32xf32>
    %c0_17 = arith.constant 0 : index
    %c0_18 = arith.constant 0 : index
    %23 = vector.load %arg7[%c0_17, %c0_18] : memref<1x32xf32, #tpu.memory_space<vmem>>, vector<1x32xf32>
    tpu.vector_store %arg7[%c0_17, %c0_18], %22 {strides = array<i32>} : memref<1x32xf32, #tpu.memory_space<vmem>>, vector<1x32xf32>,
    return
  }
}

</mosaic_0001>

<bundles_post_ra>
// kernel: neg.1
= control target key start
LH: loop header
LB: loop body
LE: loop exit
PB: predicated region body
PF: predicated region fallthrough
CT: control target
= control target key end

     0   :  { %s24_s0 = inlined_call_operand.vmem [shape: f32[64], index: 0, kind: input, shape index: {}]   ;;  %s25_s1 = inlined_call_operand.vmem [shape: f32[64], index: 1, kind: output, shape index: {}]  }
   0x1   :  { %v2_v0 = vld [vmem:[%s24_s0] sm:$0x1] }
   0x2   :  { %v5_v1 = vxor.u32 2147483648, %v2_v0 }
   0x4   :  { %7 = vst [vmem:[%s25_s1] sm:$0x1] %v5_v1 }

// kernel: graphnet_forward.1
= control target key start
LH: loop header
LB: loop body
LE: loop exit
PB: predicated region body
PF: predicated region fallthrough
CT: control target
= control target key end

     0   :  { %s729_s0 = inlined_call_operand.vmem [shape: bf16[32,32], index: 0, kind: input, shape index: {}]   ;;  %s730_s1 = inlined_call_operand.vmem [shape: bf16[32,32], index: 1, kind: input, shape index: {}]   ;;  %s731_s2 = inlined_call_operand.vmem [shape: f32[32,1], index: 2, kind: input, shape index: {}]   ;;  %s732_s3 = inlined_call_operand.vmem [shape: bf16[16,32], index: 3, kind: input, shape index: {}]   ;;  %s733_s4 = inlined_call_operand.vmem [shape: f32[16,1], index: 4, kind: input, shape index: {}]   ;;  %s734_s5 = inlined_call_operand.vmem [shape: bf16[1,16], index: 5, kind: input, shape index: {}]   ;;  %s735_s6 = inlined_call_operand.<no memory space> [shape: f32[1,1], index: 6, kind: input, shape index: {}]   ;;  %s736_s7 = inlined_call_operand.hbm [shape: f32[1,32], index: 7, kind: output, shape index: {}]  }
   0x1   :  { %v12_v0 = vstv %s735_s6 }
   0x2   :  { %13 = vst [vmem:[#allocation2] sm:$0x1] %v12_v0 }
   0x3   :  { %v516_v1 = vld [vmem:[%s729_s0 + $0x8] sm:$0xff]   ;;  %vm69_vm0 = vcmask 261120   ;;  %v505_v2 = vld [vmem:[%s730_s1] sm:$0xff]   ;;  %v617_v5 = vmov 0   ;;  %v47_v9 = vld [vmem:[%s731_s2 + $0x10] sm:$0xff] }
   0x4   :  { %v503_v3 = vunpack.c.h.bf16 %v516_v1  ;;  %v502_v4 = vunpack.c.l.bf16 %v516_v1  ;;  %593 = vset.pattern.permute.xlu0 %v617_v5  ;;  %v45_v6 = vld [vmem:[%s731_s2] sm:$0xff]  ;;  %594 = vset.pattern.permute.xlu1 %v617_v5  ;;  %v506_v8 = vunpack.c.l.bf16 %v505_v2  ;;  %v46_v10 = vld [vmem:[%s731_s2 + $0x8] sm:$0xff] }
   0x5   :  { %v497_v7 = vld [vmem:[%s729_s0] sm:$0xff]   ;;  %51 = vperm.xlu0 %593, %v45_v6   ;;  %61 = vperm.xlu1 %594, %v47_v9  }
   0x6   :  { %543 = vmatprep.subr.msk.mxu0 %vm69_vm0, %v503_v3 }
   0x7   :  { %14 = vsyncpa [#allocation4], 0  ;;  %544 = vmatpush3.xpose.msk.msra.mxu0 %vm69_vm0, %v503_v3  ;;  %551 = vmatprep.mubr.msk.f32.mxu0 %vm69_vm0, %v506_v8  ;;  %v48_v11 = vld [vmem:[%s731_s2 + $0x18] sm:$0xff]  ;;  %v499_v12 = vunpack.c.h.bf16 %v497_v7  ;;  %v281_v13 = vld [vmem:[%s733_s4 + $0x8] sm:$0xff]  ;;  %v498_v15 = vunpack.c.l.bf16 %v497_v7  ;;  %v507_v18 = vunpack.c.h.bf16 %v505_v2  ;;  %v618_v40 = vmov 0.0   ;;  %s620_s21 = smov [#allocation3]  }
   0x8   :  { %545 = vmatprep.subr.msk.mxu0 %vm69_vm0, %v502_v4  ;;  %557 = vmatprep.subr.msk.mxu1 %vm69_vm0, %v503_v3  ;;  %v280_v14 = vld [vmem:[%s733_s4] sm:$0xff]  ;;  %v517_v17 = vld [vmem:[%s730_s1 + $0x8] sm:$0xff]   ;;  %vm619_vm1 = vmmov 0   ;;  %vm387_vm2 = vcmask 130048   ;;  %v383_v51 = vlaneseq  ;;  %s469_s22 = sshll.u32 %s620_s21, 4  ;;  %vm461_vm3 = vcmask 253952   ;;  %s470_s22 = int_to_ptr.vmem [resolvable:$true] %s469_s22 }
   0x9   :  { %56 = vperm.xlu0 %593, %v46_v10   ;;  %558 = vmatpush3.xpose.msk.msra.mxu1 %vm69_vm0, %v503_v3  ;;  %v377_v16 = vld [vmem:[#allocation2] sm:$0x1]  ;;  %v510_v19 = vunpack.c.l.bf16 %v517_v17  ;;  %v511_v20 = vunpack.c.h.bf16 %v517_v17  ;;  %s599_s23 = scalar_lea.vmem %s470_s22, 32  ;;  %p600_p1 = scmp.lt.s32.totalorder %s470_s22, %s470_s22 }
   0xa   :  { %66 = vperm.xlu1 %594, %v48_v11   ;;  %559 = vmatprep.subr.msk.mxu1 %vm69_vm0, %v502_v4  ;;  %v513_v33 = vld [vmem:[%s732_s3] sm:$0xff]   ;;  %v384_v52 = vshrl.u32 %v383_v51, 7 }
   0xb   :  { %546 = vmatpush3.xpose.msk.msra.mxu0 %vm69_vm0, %v502_v4  ;;  %v514_v34 = vunpack.c.l.bf16 %v513_v33  ;;  %v515_v39 = vunpack.c.h.bf16 %v513_v33  ;;  %v375_v44 = vld [vmem:[%s734_s5] sm:$0x1]  ;;  %s595_s5 = scalar_lea.vmem %s470_s22, 16 }
   0xc   :  { %547 = vmatprep.subr.msk.mxu0 %vm69_vm0, %v499_v12  ;;  %v376_v49 = vunpack.c.l.bf16 %v375_v44  ;;  %v385_v53 = vsub.s32 0, %v384_v52  ;;  %p596_p0 = scmp.ne.s32.totalorder %s470_s22, %s595_s5  ;;  %p601_p2 = scmp.lt.s32.totalorder %s599_s23, %s595_s5 }
   0xd   :  { %289 = vperm.xlu0 %593, %v281_v13   ;;  %560 = vmatpush3.xpose.msk.msra.mxu1 %vm69_vm0, %v502_v4 }
   0xe   :  { %284 = vperm.xlu1 %594, %v280_v14   ;;  %561 = vmatprep.subr.msk.mxu1 %vm69_vm0, %v499_v12  ;;  %p602_p3 = por %p601_p2, %p600_p1 }
   0xf   :  { %548 = vmatpush3.xpose.msk.msra.mxu0 %vm69_vm0, %v499_v12 }
  0x10   :  { %549 = vmatprep.subr.msk.mxu0 %vm69_vm0, %v498_v15  ;;  %p603_p4 = pnand %p602_p3, %p596_p0 }
  0x11   :  { %380 = vperm.xlu0 %593, %v377_v16   ;;  %562 = vmatpush3.xpose.msk.msra.mxu1 %vm69_vm0, %v499_v12 }
  0x12   :  { %563 = vmatprep.subr.msk.mxu1 %vm69_vm0, %v498_v15 }
  0x13   :  { %550 = vmatpush3.xpose.msk.msra.mxu0 %vm69_vm0, %v498_v15 }
  0x15   :  { %564 = vmatpush3.xpose.msk.msra.mxu1 %vm69_vm0, %v498_v15 }
  0x16   :  { %552 = vmatmul.mubr.msk.f32.vlgmr.msra.gmra.mxu0 %vm69_vm0, %v507_v18  ;;  %582 = vmatprep.subr.mxu1 %v618_v40 }
  0x17   :  { %554 = vmatprep.mubr.msk.f32.mxu0 %vm69_vm0, %v510_v19 }
  0x1a   :  { %555 = vmatmul.mubr.msk.f32.gmra.mxu0 %vm69_vm0, %v511_v20 }
  0x1b   :  { %579 = vmatprep.mubr.msk.f32.mxu0 %vm69_vm0, %v514_v34 }
  0x80   :  { %v52_v21 = vpop.permute.xlu0 %51  ;;  %v62_v23 = vpop.permute.xlu1 %61 }
  0x84   :  { %v57_v25 = vpop.permute.xlu0 %56 }
  0x85   :  { %v67_v30 = vpop.permute.xlu1 %66 }
  0x88   :  { %v290_v41 = vpop.permute.xlu0 %289 }
  0x89   :  { %v285_v45 = vpop.permute.xlu1 %284 }
  0x8c   :  { %v381_v54 = vpop.permute.xlu0 %380 }
  0x8d   :  { %v386_v55 = vrot.slane %v381_v54, %v385_v53 }
  0xd6   :  { %v553_v22 = vpop.f32.mrf.mxu0 }
  0xd7   :  { %v166_v27 = vadd.f32 %v553_v22, %v57_v25 }
  0xd8   :  { %v160_v24 = vpop.f32.mrf.mxu0 }
  0xd9   :  { %v161_v26 = vadd.f32 %v160_v24, %v52_v21 }
  0xda   :  { %v556_v28 = vpop.f32.mrf.mxu0 }
  0xdb   :  { %565 = vmatprep.mubr.msk.f32.mxu1 %vm69_vm0, %v161_v26  ;;  %v176_v32 = vadd.f32 %v556_v28, %v67_v30 }
  0xdc   :  { %v170_v29 = vpop.f32.mrf.mxu0  ;;  %566 = vmatmul.mubr.msk.f32.vlgmr.msra.gmra.mxu1 %vm69_vm0, %v166_v27 }
  0xdd   :  { %v171_v31 = vadd.f32 %v170_v29, %v62_v23 }
  0xdf   :  { %568 = vmatprep.mubr.msk.f32.mxu1 %vm69_vm0, %v171_v31 }
  0xe0   :  { %569 = vmatmul.mubr.msk.f32.gmra.mxu1 %vm69_vm0, %v176_v32 }
  0xe1   :  { %586 = vmatprep.mubr.msk.f32.mxu1 %vm619_vm1, %v618_v40 }
 0x19c   :  { %v567_v35 = vpop.f32.mrf.mxu1 }
 0x19e   :  { %v257_v36 = vpop.f32.mrf.mxu1 }
 0x1a0   :  { %v570_v37 = vpop.f32.mrf.mxu1 }
 0x1a1   :  { %571 = vmatprep.subr.mxu0 %v570_v37 }
 0x1a2   :  { %v267_v38 = vpop.f32.mrf.mxu1  ;;  %572 = vmatpush3.msra.mxu0 %v570_v37 }
 0x1a3   :  { %573 = vmatprep.subr.mxu0 %v267_v38 }
 0x1a4   :  { %574 = vmatpush3.msra.mxu0 %v267_v38 }
 0x1a5   :  { %575 = vmatprep.subr.mxu0 %v567_v35 }
 0x1a6   :  { %576 = vmatpush3.msra.mxu0 %v567_v35 }
 0x1a7   :  { %577 = vmatprep.subr.mxu0 %v257_v36 }
 0x1a8   :  { %578 = vmatpush3.msra.mxu0 %v257_v36 }
 0x1a9   :  { %580 = vmatmul.mubr.msk.f32.vlgmr.msra.gmra.mxu0 %vm69_vm0, %v515_v39 }
 0x269   :  { %v581_v42 = vpop.f32.mrf.mxu0 }
 0x26a   :  { %v370_v43 = vadd.f32 %v581_v42, %v290_v41 }
 0x26b   :  { %v364_v46 = vpop.f32.mrf.mxu0 }
 0x26c   :  { %v374_v47 = vmax.f32 %v370_v43, 0.0  ;;  %v365_v48 = vadd.f32 %v364_v46, %v285_v45 }
 0x26e   :  { %v373_v50 = vmax.f32 %v365_v48, 0.0  ;;  %583 = vmatpush3.msra.mxu1 %v374_v47 }
 0x26f   :  { %584 = vmatprep.subr.mxu1 %v618_v40 }
 0x270   :  { %585 = vmatpush3.msra.mxu1 %v373_v50 }
 0x271   :  { %587 = vmatmul.mubr.msk.f32.vlgmr.msra.gmra.mxu1 %vm387_vm2, %v376_v49 }
 0x331   :  { %v457_v56 = vpop.f32.mrf.mxu1 }
 0x332   :  { %v458_v57 = vadd.f32 %v457_v56, %v386_v55 }
 0x333   :  { %v588_v58 = vpop.f32.mrf.mxu1 }
 0x334   :  { %462 = vst.msk [vmem:[#allocation3] sm:$0x1] %vm461_vm3, %v458_v57 }
 0x335   :  { %606 = shalt.err (!%p603_p4)
}
 0x336   :  { %472 = dma.vmem_to_hbm [thread:$0]  %s470_s22, 16, %s736_s7, [#allocation4]  }
 0x337   :  { %615 = dma.done.wait [#allocation4], 16  }
 0x338   :  { %616 = vsyncadd [#allocation4], 4294967280 }
 0x339   :  { %476 = vsyncpa [#allocation4], 1 }

</bundles_post_ra>
